<compile_context>
chip_gen: v7x
topology: tpu7x:2x2x1
jax: 0.10.0
libtpu: 0.0.40
codegen_flags: <defaults>
</compile_context>

<pallas_src>
import functools

import jax
import jax.numpy as jnp
from jax.experimental import pallas as pl
from jax.experimental.pallas import tpu as pltpu


def _round_up(x, m):
    return -(-x // m) * m


def _physical_vmem_bytes():
    try:
        return int(pltpu.get_tpu_info().vmem_capacity_bytes)
    except Exception:
        return 64 << 20  # conservative: v7x per-TensorCore VMEM


def _choose_tm(B, T, tm_max, min_grid):
    """Largest multiple-of-8 row tile that either divides T (stays inside a
    batch row) or equals k*T (spans k whole batch rows), preferring tiles that
    leave >= min_grid grid steps for pipelining / megacore sharding."""
    M = B * T
    cands = set()
    for d in range(8, min(T, tm_max) + 1, 8):
        if T % d == 0:
            cands.add(d)
    for k in range(1, B + 1):
        if B % k == 0:
            c = k * T
            if c <= tm_max and c % 8 == 0:
                cands.add(c)
    cands = sorted(cands)
    assert cands, "ch*seq (or a whole-batch multiple of it) needs a multiple-of-8 tile"
    viable = [c for c in cands if M // c >= min_grid]
    return max(viable) if viable else max(cands)


def _embed_kernel(x_ref, flag_ref, menc_ref, w_ref, b_ref, pos_ref, o_ref,
                  *, tm, T, pos_full_table):
    # x_ref    : (tm, K)   token rows for this block
    # flag_ref : (tm, 1)   f32, 1.0 -> replace row with mask_encoding
    # menc_ref : (1, K)    mask encoding (resident)
    # w_ref    : (K, D)    projection weight (resident)
    # b_ref    : (1, D)    projection bias (resident)
    # pos_ref  : (T, D) resident full table  OR  (tm, D) per-block rows
    # o_ref    : (tm, D)   lane-dense output block
    x = x_ref[...]
    masked = jnp.where(flag_ref[...] > 0.5, menc_ref[...], x)              # VPU select
    acc = jnp.dot(masked, w_ref[...], preferred_element_type=jnp.float32)  # MXU
    if pos_full_table:
        # tm | T, so block i's positional rows are an aligned, contiguous
        # slice of the fully VMEM-resident (T, D) table.
        start = pl.multiple_of((pl.program_id(0) * tm) % T, tm)
        pos = pos_ref[pl.ds(start, tm), :]
    else:
        pos = pos_ref[...]                                                  # (tm, D)
    o_ref[...] = (acc + b_ref[...].astype(jnp.float32)
                  + pos.astype(jnp.float32)).astype(o_ref.dtype)


def input_embedding_forward(data, params, *, need_mask, mask_by_ch, rand_mask,
                            mask_len, mask=None, tm_max=1024, min_grid=8,
                            storage_dtype=jnp.float32, pos_resident_budget=None):
    """Linear-mode forward of InputEmbedding.

    data : (B, ch, seq, seg) with seg == in_dim
    returns (B, ch*seq, d_model) in `storage_dtype`
    """
    w, b, pos, mask_encoding = (params["w"], params["b"],
                                params["pos"], params["mask_encoding"])
    B, CH, SQ, SEG = data.shape
    T = CH * SQ
    D = w.shape[1]
    assert pos.shape == (T, D), "ch*seq must equal seq_len*16 (positional rows)"

    # ---- per-token mask flags (cheap glue, O(B*T)) ----
    if not need_mask:
        flag = jnp.zeros((B, T), jnp.float32)
    elif rand_mask:
        if mask_by_ch:
            # TODO(synk): mask_by_ch keeps a 4-D output layout in PyTorch; only
            # the flattened token path is implemented here.
            raise NotImplementedError("mask_by_ch path not supported")
        token_ids = jnp.arange(T, dtype=jnp.int32)[None, :, None]          # (1,T,1)
        flag = jnp.any(token_ids == mask[:, None, :], axis=-1).astype(jnp.float32)
    else:
        if mask_len <= 0:
            # PyTorch's data[:, :, -0:, :] slice selects every row.
            seq_flag = jnp.ones((SQ,), jnp.float32)
        else:
            seq_flag = (jnp.arange(SQ) >= (SQ - mask_len)).astype(jnp.float32)
        flag = jnp.broadcast_to(jnp.tile(seq_flag, (CH,))[None, :], (B, T))

    # ---- flatten / cast operands ----
    sdt = jnp.dtype(storage_dtype)
    x_flat = data.reshape(B * T, SEG).astype(sdt)
    flag_flat = flag.reshape(B * T, 1)
    menc_2d = mask_encoding.reshape(1, SEG).astype(sdt)
    w_s = w.astype(sdt)
    b_2d = b.reshape(1, D).astype(sdt)
    pos_s = pos.astype(sdt)

    M = B * T
    tm = _choose_tm(B, T, tm_max, min_grid)
    item = sdt.itemsize

    # ---- positional-table strategy ----
    phys_vmem = _physical_vmem_bytes()
    if pos_resident_budget is None:
        pos_resident_budget = phys_vmem // 4
    if tm >= T:
        # Block spans k whole batch rows: pre-tile pos once to (tm, D) in the
        # wrapper (tiny one-time cost) and keep it resident.
        k_span = tm // T
        pos_in = jnp.tile(pos_s, (k_span, 1)) if k_span > 1 else pos_s
        pos_mode = "resident_tiled"
        pos_rows = tm
    else:
        pos_rows = T
        pos_bytes = _round_up(T, 8) * _round_up(D, 128) * item
        pos_in = pos_s
        pos_mode = "resident_full" if pos_bytes <= pos_resident_budget else "streamed"
    pos_full_table = pos_mode == "resident_full"

    # ---- explicit VMEM budget (conservative: assume everything double-
    #      buffered, then clamp to physical capacity) ----
    resident = (8 * _round_up(SEG, 128)
                + 8 * _round_up(D, 128)
                + _round_up(SEG, 8) * _round_up(D, 128)) * item
    if pos_mode != "streamed":
        resident += _round_up(pos_rows, 8) * _round_up(D, 128) * item
    streamed = 2 * tm * (_round_up(SEG, 128) * item     # x blocks
                         + 128 * 4                      # flag, lane-padded f32
                         + _round_up(D, 128) * item)    # output blocks
    if pos_mode == "streamed":
        streamed += 2 * tm * _round_up(D, 128) * item
    need = 2 * resident + streamed
    vmem_limit = int(min(max(need * 1.25 + (2 << 20), 16 << 20),
                         phys_vmem - (4 << 20)))

    kernel = functools.partial(_embed_kernel, tm=tm, T=T,
                               pos_full_table=pos_full_table)

    def make_call(single_buffer_residents):
        def res_spec(shape, index_map):
            # Residents are fetched exactly once; a single buffer halves their
            # VMEM footprint.
            if single_buffer_residents:
                return pl.BlockSpec(shape, index_map, pipeline_mode=pl.Buffered(1))
            return pl.BlockSpec(shape, index_map)

        if pos_mode == "streamed":
            pos_spec = pl.BlockSpec((tm, D), lambda i: (i % (T // tm), 0))
        elif pos_mode == "resident_full":
            pos_spec = res_spec((T, D), lambda i: (0, 0))
        else:  # resident_tiled
            pos_spec = res_spec((tm, D), lambda i: (0, 0))

        return pl.pallas_call(
            kernel,
            out_shape=jax.ShapeDtypeStruct((M, D), sdt),
            grid_spec=pltpu.PrefetchScalarGridSpec(
                num_scalar_prefetch=0,
                grid=(M // tm,),                                   # 1-D token grid
                in_specs=[
                    pl.BlockSpec((tm, SEG), lambda i: (i, 0)),     # x block
                    pl.BlockSpec((tm, 1), lambda i: (i, 0)),       # flag block
                    res_spec((1, SEG), lambda i: (0, 0)),          # mask encoding
                    res_spec((SEG, D), lambda i: (0, 0)),          # W
                    res_spec((1, D), lambda i: (0, 0)),            # bias
                    pos_spec,                                      # positions
                ],
                out_specs=pl.BlockSpec((tm, D), lambda i: (i, 0)),
            ),
            compiler_params=pltpu.CompilerParams(
                dimension_semantics=("parallel",),
                vmem_limit_bytes=vmem_limit),
        )

    args = (x_flat, flag_flat, menc_2d, w_s, b_2d, pos_in)
    try:
        out = make_call(True)(*args)
    except Exception:
        # Fallback for JAX versions without BlockSpec(pipeline_mode=...):
        # default double-buffered residents.
        out = make_call(False)(*args)

    return out.reshape(B, T, D)


def init_params(key, in_dim, seq_len_param, d_model):
    k1, k2, k3 = jax.random.split(key, 3)
    # nn.Parameter(torch.randn(seq_len*16, d_model))
    pos = jax.random.normal(k1, (seq_len_param * 16, d_model), jnp.float32)
    # learnable mask encoding: torch.randn(in_dim)
    mask_encoding = jax.random.normal(k2, (in_dim,), jnp.float32)
    # Linear(in_dim, d_model): trunc_normal(std=0.02, a=-std, b=std), bias=0
    w = jax.random.truncated_normal(k3, -1.0, 1.0,
                                    (in_dim, d_model), jnp.float32) * 0.02
    b = jnp.zeros((d_model,), jnp.float32)
    return {"w": w, "b": b, "pos": pos, "mask_encoding": mask_encoding}


if __name__ == "__main__":
    # consistent shapes: ch_num * seq == seq_len_param * 16
    B, CH, SQ = 2, 16, 8
    IN_DIM = 128          # == seg_len == Linear in_dim
    SEQ_PARAM = 8         # -> positional rows = 128 == CH*SQ
    D_MODEL = 256

    key = jax.random.PRNGKey(0)
    kp, kd, km = jax.random.split(key, 3)
    params = init_params(kp, IN_DIM, SEQ_PARAM, D_MODEL)

    data = jax.random.normal(kd, (B, CH, SQ, IN_DIM), jnp.float32)
    # rand_mask (not by channel): per-batch token indices to mask
    mask = jax.random.randint(km, (B, 3), 0, CH * SQ, dtype=jnp.int32)

    # pure-JAX reference
    T = CH * SQ
    tok = jnp.arange(T, dtype=jnp.int32)[None, :, None]
    flag = jnp.any(tok == mask[:, None, :], axis=-1)
    x_flat = data.reshape(B, T, IN_DIM)
    masked = jnp.where(flag[..., None], params["mask_encoding"][None, None, :], x_flat)
    ref = masked @ params["w"] + params["b"][None, None, :] + params["pos"][None]

    # 1) f32, pos table fully VMEM-resident, tile inside a batch row (grid of 8)
    out = input_embedding_forward(
        data, params, need_mask=True, mask_by_ch=False, rand_mask=True,
        mask_len=0, mask=mask)
    out = jax.block_until_ready(out)
    assert out.shape == (B, T, D_MODEL)
    assert jnp.max(jnp.abs(out - ref)) < 5e-4

    # 2) f32, pos table streamed per block (exercises the v7x "large pos" path)
    out_s = input_embedding_forward(
        data, params, need_mask=True, mask_by_ch=False, rand_mask=True,
        mask_len=0, mask=mask, pos_resident_budget=0)
    out_s = jax.block_until_ready(out_s)
    assert jnp.max(jnp.abs(out_s - ref)) < 5e-4

    # 3) bf16 storage, tile spanning both batch rows (pre-tiled resident pos)
    out_bf = input_embedding_forward(
        data, params, need_mask=True, mask_by_ch=False, rand_mask=True,
        mask_len=0, mask=mask, storage_dtype=jnp.bfloat16, min_grid=1)
    out_bf = jax.block_until_ready(out_bf)
    assert out_bf.dtype == jnp.bfloat16
    assert jnp.max(jnp.abs(out_bf.astype(jnp.float32) - ref)) < 1.5e-1

    print("KERNEL_OK")
</pallas_src>

<mosaic_0001>
module attributes {stable_mosaic.version = 11 : i64} {
  func.func @_embed_kernel(%arg0: i32, %arg1: memref<32x128xf32, #tpu.memory_space<vmem>>, %arg2: memref<32x1xf32, #tpu.memory_space<vmem>>, %arg3: memref<1x128xf32, #tpu.memory_space<vmem>>, %arg4: memref<128x256xf32, #tpu.memory_space<vmem>>, %arg5: memref<1x256xf32, #tpu.memory_space<vmem>>, %arg6: memref<128x256xf32, #tpu.memory_space<vmem>>, %arg7: memref<32x256xf32, #tpu.memory_space<vmem>>) attributes {dimension_semantics = [#tpu.dimension_semantics<parallel>], iteration_bounds = array<i64: 8>, scalar_prefetch = 0 : i64, scratch_operands = 0 : i64, tpu.core_type = #tpu.core_type<tc>, window_params = [{transform_indices = @transform_0, window_bounds = array<i64: 32, 128>}, {transform_indices = @transform_1, window_bounds = array<i64: 32, 1>}, {pipeline_mode = #tpu.pipeline_mode<synchronous>, transform_indices = @transform_2, window_bounds = array<i64: 1, 128>}, {pipeline_mode = #tpu.pipeline_mode<synchronous>, transform_indices = @transform_3, window_bounds = array<i64: 128, 256>}, {pipeline_mode = #tpu.pipeline_mode<synchronous>, transform_indices = @transform_4, window_bounds = array<i64: 1, 256>}, {pipeline_mode = #tpu.pipeline_mode<synchronous>, transform_indices = @transform_5, window_bounds = array<i64: 128, 256>}, {transform_indices = @transform_6, window_bounds = array<i64: 32, 256>}]} {
    %c0 = arith.constant 0 : index
    %c0_0 = arith.constant 0 : index
    %0 = vector.load %arg1[%c0, %c0_0] : memref<32x128xf32, #tpu.memory_space<vmem>>, vector<32x128xf32>
    %c0_1 = arith.constant 0 : index
    %c0_2 = arith.constant 0 : index
    %1 = vector.load %arg2[%c0_1, %c0_2] : memref<32x1xf32, #tpu.memory_space<vmem>>, vector<32x1xf32>
    %cst = arith.constant 5.000000e-01 : f32
    %2 = vector.broadcast %cst : f32 to vector<32x1xf32>
    %3 = arith.cmpf ogt, %1, %2 : vector<32x1xf32>
    %c0_3 = arith.constant 0 : index
    %c0_4 = arith.constant 0 : index
    %4 = vector.load %arg3[%c0_3, %c0_4] : memref<1x128xf32, #tpu.memory_space<vmem>>, vector<1x128xf32>
    %5 = vector.shape_cast %3 : vector<32x1xi1> to vector<32x1xi1>
    %6 = vector.broadcast %5 : vector<32x1xi1> to vector<32x128xi1>
    %7 = vector.shape_cast %4 : vector<1x128xf32> to vector<1x128xf32>
    %8 = vector.broadcast %7 : vector<1x128xf32> to vector<32x128xf32>
    %9 = arith.select %6, %8, %0 : vector<32x128xi1>, vector<32x128xf32>
    %c0_5 = arith.constant 0 : index
    %c0_6 = arith.constant 0 : index
    %10 = vector.load %arg4[%c0_5, %c0_6] : memref<128x256xf32, #tpu.memory_space<vmem>>, vector<128x256xf32>
    %cst_7 = arith.constant dense<0.000000e+00> : vector<32x256xf32>
    %11 = tpu.matmul %9, %10, %cst_7 {dimension_numbers = #tpu.dot_dimension_numbers<[1], [0], [0], [1], [0, 0, 1, 1], [], []>} : vector<32x128xf32>, vector<128x256xf32>, vector<32x256xf32> -> vector<32x256xf32>
    %c32_i32 = arith.constant 32 : i32
    %12 = arith.muli %arg0, %c32_i32 : i32
    %c128_i32 = arith.constant 128 : i32
    %c0_i32 = arith.constant 0 : i32
    %13 = arith.cmpi eq, %c128_i32, %c0_i32 : i32
    %c1_i32 = arith.constant 1 : i32
    %14 = arith.select %13, %c1_i32, %c128_i32 : i32
    %15 = arith.remsi %12, %14 : i32
    %c0_i32_8 = arith.constant 0 : i32
    %16 = arith.cmpi ne, %15, %c0_i32_8 : i32
    %c0_i32_9 = arith.constant 0 : i32
    %17 = arith.cmpi slt, %15, %c0_i32_9 : i32
    %c0_i32_10 = arith.constant 0 : i32
    %18 = arith.cmpi slt, %14, %c0_i32_10 : i32
    %19 = arith.xori %17, %18 : i1
    %20 = arith.andi %19, %16 : i1
    %21 = arith.addi %15, %14 : i32
    %22 = arith.select %20, %21, %15 : i32
    %23 = tpu.assume_multiple %22, 32 : i32
    %24 = arith.index_cast %23 : i32 to index
    %c0_11 = arith.constant 0 : index
    %25 = vector.load %arg6[%24, %c0_11] : memref<128x256xf32, #tpu.memory_space<vmem>>, vector<32x256xf32>
    %c0_12 = arith.constant 0 : index
    %c0_13 = arith.constant 0 : index
    %26 = vector.load %arg5[%c0_12, %c0_13] : memref<1x256xf32, #tpu.memory_space<vmem>>, vector<1x256xf32>
    %27 = vector.broadcast %26 : vector<1x256xf32> to vector<32x256xf32>
    %28 = arith.addf %11, %27 : vector<32x256xf32>
    %29 = arith.addf %28, %25 : vector<32x256xf32>
    %c0_14 = arith.constant 0 : index
    %c0_15 = arith.constant 0 : index
    %30 = vector.load %arg7[%c0_14, %c0_15] : memref<32x256xf32, #tpu.memory_space<vmem>>, vector<32x256xf32>
    tpu.vector_store %arg7[%c0_14, %c0_15], %29 {strides = array<i32>} : memref<32x256xf32, #tpu.memory_space<vmem>>, vector<32x256xf32>,
    return
  }
  func.func @transform_0(%arg0: i32) -> (i32, i32) {
    %c0_i32 = arith.constant 0 : i32
    %c0_i32_0 = arith.constant 0 : i32
    return %arg0, %c0_i32 : i32, i32
  }
  func.func @transform_1(%arg0: i32) -> (i32, i32) {
    %c0_i32 = arith.constant 0 : i32
    %c0_i32_0 = arith.constant 0 : i32
    return %arg0, %c0_i32 : i32, i32
  }
  func.func @transform_2(%arg0: i32) -> (i32, i32) {
    %c0_i32 = arith.constant 0 : i32
    %c0_i32_0 = arith.constant 0 : i32
    %c0_i32_1 = arith.constant 0 : i32
    return %c0_i32, %c0_i32_0 : i32, i32
  }
  func.func @transform_3(%arg0: i32) -> (i32, i32) {
    %c0_i32 = arith.constant 0 : i32
    %c0_i32_0 = arith.constant 0 : i32
    %c0_i32_1 = arith.constant 0 : i32
    return %c0_i32, %c0_i32_0 : i32, i32
  }
  func.func @transform_4(%arg0: i32) -> (i32, i32) {
    %c0_i32 = arith.constant 0 : i32
    %c0_i32_0 = arith.constant 0 : i32
    %c0_i32_1 = arith.constant 0 : i32
    return %c0_i32, %c0_i32_0 : i32, i32
  }
  func.func @transform_5(%arg0: i32) -> (i32, i32) {
    %c0_i32 = arith.constant 0 : i32
    %c0_i32_0 = arith.constant 0 : i32
    %c0_i32_1 = arith.constant 0 : i32
    return %c0_i32, %c0_i32_0 : i32, i32
  }
  func.func @transform_6(%arg0: i32) -> (i32, i32) {
    %c0_i32 = arith.constant 0 : i32
    %c0_i32_0 = arith.constant 0 : i32
    return %arg0, %c0_i32 : i32, i32
  }
}

module attributes {stable_mosaic.version = 11 : i64} {
  func.func @_embed_kernel(%arg0: i32, %arg1: memref<32x128xf32, #tpu.memory_space<vmem>>, %arg2: memref<32x1xf32, #tpu.memory_space<vmem>>, %arg3: memref<1x128xf32, #tpu.memory_space<vmem>>, %arg4: memref<128x256xf32, #tpu.memory_space<vmem>>, %arg5: memref<1x256xf32, #tpu.memory_space<vmem>>, %arg6: memref<128x256xf32, #tpu.memory_space<vmem>>, %arg7: memref<32x256xf32, #tpu.memory_space<vmem>>) attributes {dimension_semantics = [#tpu.dimension_semantics<parallel>], iteration_bounds = array<i64: 8>, scalar_prefetch = 0 : i64, scratch_operands = 0 : i64, tpu.core_type = #tpu.core_type<tc>, window_params = [{transform_indices = @transform_0, window_bounds = array<i64: 32, 128>}, {transform_indices = @transform_1, window_bounds = array<i64: 32, 1>}, {pipeline_mode = #tpu.pipeline_mode<synchronous>, transform_indices = @transform_2, window_bounds = array<i64: 1, 128>}, {pipeline_mode = #tpu.pipeline_mode<synchronous>, transform_indices = @transform_3, window_bounds = array<i64: 128, 256>}, {pipeline_mode = #tpu.pipeline_mode<synchronous>, transform_indices = @transform_4, window_bounds = array<i64: 1, 256>}, {pipeline_mode = #tpu.pipeline_mode<synchronous>, transform_indices = @transform_5, window_bounds = array<i64: 128, 256>}, {transform_indices = @transform_6, window_bounds = array<i64: 32, 256>}]} {
    %c0 = arith.constant 0 : index
    %c0_0 = arith.constant 0 : index
    %0 = vector.load %arg1[%c0, %c0_0] : memref<32x128xf32, #tpu.memory_space<vmem>>, vector<32x128xf32>
    %c0_1 = arith.constant 0 : index
    %c0_2 = arith.constant 0 : index
    %1 = vector.load %arg2[%c0_1, %c0_2] : memref<32x1xf32, #tpu.memory_space<vmem>>, vector<32x1xf32>
    %cst = arith.constant 5.000000e-01 : f32
    %2 = vector.broadcast %cst : f32 to vector<32x1xf32>
    %3 = arith.cmpf ogt, %1, %2 : vector<32x1xf32>
    %c0_3 = arith.constant 0 : index
    %c0_4 = arith.constant 0 : index
    %4 = vector.load %arg3[%c0_3, %c0_4] : memref<1x128xf32, #tpu.memory_space<vmem>>, vector<1x128xf32>
    %5 = vector.shape_cast %3 : vector<32x1xi1> to vector<32x1xi1>
    %6 = vector.broadcast %5 : vector<32x1xi1> to vector<32x128xi1>
    %7 = vector.shape_cast %4 : vector<1x128xf32> to vector<1x128xf32>
    %8 = vector.broadcast %7 : vector<1x128xf32> to vector<32x128xf32>
    %9 = arith.select %6, %8, %0 : vector<32x128xi1>, vector<32x128xf32>
    %c0_5 = arith.constant 0 : index
    %c0_6 = arith.constant 0 : index
    %10 = vector.load %arg4[%c0_5, %c0_6] : memref<128x256xf32, #tpu.memory_space<vmem>>, vector<128x256xf32>
    %cst_7 = arith.constant dense<0.000000e+00> : vector<32x256xf32>
    %11 = tpu.matmul %9, %10, %cst_7 {dimension_numbers = #tpu.dot_dimension_numbers<[1], [0], [0], [1], [0, 0, 1, 1], [], []>} : vector<32x128xf32>, vector<128x256xf32>, vector<32x256xf32> -> vector<32x256xf32>
    %c32_i32 = arith.constant 32 : i32
    %12 = arith.muli %arg0, %c32_i32 : i32
    %c128_i32 = arith.constant 128 : i32
    %c0_i32 = arith.constant 0 : i32
    %13 = arith.cmpi eq, %c128_i32, %c0_i32 : i32
    %c1_i32 = arith.constant 1 : i32
    %14 = arith.select %13, %c1_i32, %c128_i32 : i32
    %15 = arith.remsi %12, %14 : i32
    %c0_i32_8 = arith.constant 0 : i32
    %16 = arith.cmpi ne, %15, %c0_i32_8 : i32
    %c0_i32_9 = arith.constant 0 : i32
    %17 = arith.cmpi slt, %15, %c0_i32_9 : i32
    %c0_i32_10 = arith.constant 0 : i32
    %18 = arith.cmpi slt, %14, %c0_i32_10 : i32
    %19 = arith.xori %17, %18 : i1
    %20 = arith.andi %19, %16 : i1
    %21 = arith.addi %15, %14 : i32
    %22 = arith.select %20, %21, %15 : i32
    %23 = tpu.assume_multiple %22, 32 : i32
    %24 = arith.index_cast %23 : i32 to index
    %c0_11 = arith.constant 0 : index
    %25 = vector.load %arg6[%24, %c0_11] : memref<128x256xf32, #tpu.memory_space<vmem>>, vector<32x256xf32>
    %c0_12 = arith.constant 0 : index
    %c0_13 = arith.constant 0 : index
    %26 = vector.load %arg5[%c0_12, %c0_13] : memref<1x256xf32, #tpu.memory_space<vmem>>, vector<1x256xf32>
    %27 = vector.broadcast %26 : vector<1x256xf32> to vector<32x256xf32>
    %28 = arith.addf %11, %27 : vector<32x256xf32>
    %29 = arith.addf %28, %25 : vector<32x256xf32>
    %c0_14 = arith.constant 0 : index
    %c0_15 = arith.constant 0 : index
    %30 = vector.load %arg7[%c0_14, %c0_15] : memref<32x256xf32, #tpu.memory_space<vmem>>, vector<32x256xf32>
    tpu.vector_store %arg7[%c0_14, %c0_15], %29 {strides = array<i32>} : memref<32x256xf32, #tpu.memory_space<vmem>>, vector<32x256xf32>,
    return
  }
  func.func @transform_0(%arg0: i32) -> (i32, i32) {
    %c0_i32 = arith.constant 0 : i32
    %c0_i32_0 = arith.constant 0 : i32
    return %arg0, %c0_i32 : i32, i32
  }
  func.func @transform_1(%arg0: i32) -> (i32, i32) {
    %c0_i32 = arith.constant 0 : i32
    %c0_i32_0 = arith.constant 0 : i32
    return %arg0, %c0_i32 : i32, i32
  }
  func.func @transform_2(%arg0: i32) -> (i32, i32) {
    %c0_i32 = arith.constant 0 : i32
    %c0_i32_0 = arith.constant 0 : i32
    %c0_i32_1 = arith.constant 0 : i32
    return %c0_i32, %c0_i32_0 : i32, i32
  }
  func.func @transform_3(%arg0: i32) -> (i32, i32) {
    %c0_i32 = arith.constant 0 : i32
    %c0_i32_0 = arith.constant 0 : i32
    %c0_i32_1 = arith.constant 0 : i32
    return %c0_i32, %c0_i32_0 : i32, i32
  }
  func.func @transform_4(%arg0: i32) -> (i32, i32) {
    %c0_i32 = arith.constant 0 : i32
    %c0_i32_0 = arith.constant 0 : i32
    %c0_i32_1 = arith.constant 0 : i32
    return %c0_i32, %c0_i32_0 : i32, i32
  }
  func.func @transform_5(%arg0: i32) -> (i32, i32) {
    %c0_i32 = arith.constant 0 : i32
    %c0_i32_0 = arith.constant 0 : i32
    %c0_i32_1 = arith.constant 0 : i32
    return %c0_i32, %c0_i32_0 : i32, i32
  }
  func.func @transform_6(%arg0: i32) -> (i32, i32) {
    %c0_i32 = arith.constant 0 : i32
    %c0_i32_0 = arith.constant 0 : i32
    return %arg0, %c0_i32 : i32, i32
  }
}

</mosaic_0001>

<bundles_post_ra>
// kernel: tpu_custom_call.1
= control target key start
LH: loop header
LB: loop body
LE: loop exit
PB: predicated region body
PF: predicated region fallthrough
CT: control target
= control target key end

     0   :  { %11 = vsyncpa [#allocation3], 0  ;;  %s1174_s0 = inlined_call_operand.vmem [shape: f32[256,128], index: 0, kind: input, shape index: {}]   ;;  %s1175_s1 = inlined_call_operand.vmem [shape: f32[256,1], index: 1, kind: input, shape index: {}]   ;;  %s1176_s2 = inlined_call_operand.vmem [shape: f32[1,128], index: 2, kind: input, shape index: {}]   ;;  %s1177_s3 = inlined_call_operand.hbm [shape: f32[128,256], index: 3, kind: input, shape index: {}]   ;;  %s1178_s4 = inlined_call_operand.vmem [shape: f32[1,256], index: 4, kind: input, shape index: {}]   ;;  %s1179_s5 = inlined_call_operand.hbm [shape: f32[128,256], index: 5, kind: input, shape index: {}]   ;;  %s1180_s6 = inlined_call_operand.hbm [shape: f32[256,256], index: 6, kind: output, shape index: {}]  }
   0x1   :  { %12 = vsyncpa [#allocation6], 0 }
   0x2   :  { %13 = vsyncpa [#allocation4], 0 }
   0x3   :  { %15 = vsyncpa [#allocation4 + $0x1], 0  ;;  %s953_s21 = smov 0   ;;  %s955_s22 = smov 0  }
   0x4   :  { %s957_s23 = smov 0   ;;  %s959_s24 = smov 0  }
   0x5 LB: > { %s974_s25 = sadd.s32 4294967295, %s907_s24   ;;  %s636_s26 = sadd.s32 4294967294, %s907_s24   ;;  %s907_s24 = sphi %s959_s24, %s1198_s24   ;;  %s903_s23 = sphi %s957_s23, %s1197_s23   ;;  %s899_s22 = sphi %s955_s22, %s1196_s22   ;;  %s895_s21 = sphi %s953_s21, %s1195_s21  }
   0x6   : > { %s978_s27 = sadd.s32 1, %s907_s24   ;;  %s164_s28 = sadd.s32 1, %s903_s23 }
   0x7   : > { %s161_s29 = ssub.s32 %s907_s24, %s978_s27  ;;  %p174_p0 = scmp.ne.s32.totalorder %s903_s23, %s899_s22 }
   0x8   : > { %p162_p1 = scmp.eq.s32.totalorder %s161_s29, 0  ;;  %p175_p2 = scmp.eq.s32.totalorder %s974_s25, 7 }
   0x9   : > { %p180_p3 = scmp.ne.s32.totalorder %s899_s22, %s895_s21  ;;  %p181_p4 = scmp.eq.s32.totalorder %s636_s26, 7 }
   0xa   : > { %s989_s30 = scalar_select %p162_p1, %s903_s23, %s164_s28  }
   0xb   : > { %p991_p5 = por %p175_p2, %p174_p0  ;;  %p995_p6 = por %p181_p4, %p180_p3 }
   0xc   : > { %p637_p7 = scmp.ge.s32.totalorder %s907_s24, 1  ;;  %p188_p8 = scmp.lt.s32.totalorder %s907_s24, 9 }
   0xd   : > { %s1184_s7 = scalar_select %p991_p5, 1, 0 }
   0xe   : > { %s1185_s8 = scalar_select %p995_p6, 1, 0 }
   0xf   : > { %p1181_p9 = scmp.eq.s32.totalorder %s974_s25, 0  ;;  %p1002_p10 = pnand %p637_p7, %p188_p8 }
  0x10   : > { %s909_s10 = smov [#allocation2]   ;;  %s910_s13 = smov [#allocation5]  }
  0x11   : > { %s1186_s9 = scalar_select %p1002_p10, 1, 0 }
  0x12   : > { %s203_s11 = sshll.u32 %s909_s10, 4  ;;  %p723_p11 = pneg %p1002_p10  ;;  %s204_s11 = int_to_ptr.vmem [resolvable:$true] %s203_s11 }
  0x13   : > { %s219_s14 = sshll.u32 %s910_s13, 4  ;;  %s781_s17 = scalar_lea.hbm %s1177_s3, 4096  ;;  %s1014_s14 = int_to_ptr.vmem [resolvable:$true] %s219_s14 }
  0x14   : > { %p1010_p12 = pnand %p1181_p9, %p723_p11  ;;  %p782_p13 = scmp.ne.s32.totalorder %s1177_s3, %s781_s17 }
  0x15   : > { %p788_p3 = scmp.lt.u32.totalorder %s781_s17, %s1177_s3 }
  0x16   : > { %p783_p0 = pneg %p1010_p12 }
  0x18   : > { %p784_p1 = pnand %p783_p0, %p782_p13 }
  0x1a   : > { %p785_p2 = pneg %p784_p1 }
  0x1c   : > { %p790_p4 = pnand %p788_p3, %p785_p2 }
  0x1e   : > { %793 = shalt.err (!%p790_p4)
}
  0x1f   : > { %s794_s28 = scalar_lea.vmem %s204_s11, 4096  ;;  %p802_p9 = scmp.lt.s32.totalorder %s204_s11, %s204_s11 }
  0x20   : > { %p795_p7 = scmp.ne.s32.totalorder %s204_s11, %s794_s28  ;;  %p803_p6 = scmp.lt.s32.totalorder %s794_s28, %s794_s28 }
  0x22   : > { %p797_p8 = pnand %p795_p7, %p783_p0  ;;  %p804_p5 = por %p803_p6, %p802_p9 }
  0x24   : > { %p798_p11 = pneg %p797_p8 }
  0x26   : > { %p805_p10 = pnand %p804_p5, %p798_p11 }
  0x28   : > { %808 = shalt.err (!%p805_p10)
}
  0x29   : > { %s911_s29 = smov 256   ;;  %s912_s10 = smov 16  }
  0x2a   : > { %726 = dma.hbm_to_vmem [thread:$0]  (!%p1010_p12), %s1177_s3, 4096, %s204_s11, [#allocation3], %s911_s29, %s911_s29, %s912_s10  }
  0x2b   : > { %s809_s18 = scalar_lea.hbm %s1179_s5, 4096 }
  0x2c   : > { %p810_p13 = scmp.ne.s32.totalorder %s1179_s5, %s809_s18  ;;  %p816_p9 = scmp.lt.u32.totalorder %s809_s18, %s1179_s5 }
  0x2e   : > { %p812_p5 = pnand %p810_p13, %p783_p0 }
  0x30   : > { %p813_p6 = pneg %p812_p5 }
  0x32   : > { %p818_p10 = pnand %p816_p9, %p813_p6 }
  0x34   : > { %821 = shalt.err (!%p818_p10)
}
  0x35   : > { %s822_s11 = scalar_lea.vmem %s1014_s14, 4096  ;;  %p830_p4 = scmp.lt.s32.totalorder %s1014_s14, %s1014_s14 }
  0x36   : > { %p823_p1 = scmp.ne.s32.totalorder %s1014_s14, %s822_s11  ;;  %p831_p7 = scmp.lt.s32.totalorder %s822_s11, %s822_s11 }
  0x38   : > { %p825_p2 = pnand %p823_p1, %p783_p0  ;;  %p832_p8 = por %p831_p7, %p830_p4 }
  0x3a   : > { %p826_p3 = pneg %p825_p2 }
  0x3c   : > { %p833_p11 = pnand %p832_p8, %p826_p3 }
  0x3e   : > { %836 = shalt.err (!%p833_p11)
}
  0x3f   : > { %729 = dma.hbm_to_vmem [thread:$0]  (!%p1010_p12), %s1179_s5, 4096, %s1014_s14, [#allocation6], %s911_s29, %s911_s29, %s912_s10  }
  0x40   : > { %p1188_p13 = scmp.ne.s32.totalorder %s1186_s9, 0 }
  0x41   : > { %p1189_p5 = scmp.eq.s32.totalorder (!%p1188_p13), %s974_s25, 0 }
  0x42   : > { %253 = sbr.rel (%p1188_p13) target bundleno = 457 (0x1c9), region = 44 }
  0x49   : > { %882 = dma.done.wait (%p1189_p5), [#allocation3], 4096   ;;  %p1190_p0 = pmov %p1189_p5 }
  0x4b   : > { %884 = vsyncadd (%p1190_p0), [#allocation3], 4294963200  ;;  %p1191_p6 = pmov %p1190_p0 }
  0x4c   : > { %p1192_p9 = pmov %p1190_p0 }
  0x4d   : > { %886 = dma.done.wait (%p1191_p6), [#allocation6], 4096  }
  0x4e   : > { %888 = vsyncadd (%p1192_p9), [#allocation6], 4294963200  ;;  %s645_s12 = sshll.u32 %s974_s25, 2  ;;  %v913_v0 = vmov 0   ;;  %v349_v5 = vld [vmem:[#allocation2 + $0x8] sm:$0xff]  ;;  %v351_v6 = vld [vmem:[#allocation2 + $0x18] sm:$0xff] }
  0x4f   : > { %780 = vset.pattern.permute.xlu1 %v913_v0  ;;  %779 = vset.pattern.permute.xlu0 %v913_v0  ;;  %p293_p12 = scmp.lt.s32.totalorder %s645_s12, 31  ;;  %v348_v9 = vld [vmem:[#allocation2] sm:$0xff]  ;;  %v350_v10 = vld [vmem:[#allocation2 + $0x10] sm:$0xff]  ;;  %v665_v11 = vpack.c.bf16 %v351_v6, %v349_v5  ;;  %v353_v13 = vld [vmem:[#allocation2 + $0x28] sm:$0xff]  ;;  %v914_v22 = vmov 0.0   ;;  %s650_s26 = sshll.u32 %s974_s25, 5 }
  0x50   : > { %v667_v12 = vpack.c.bf16 %v350_v10, %v348_v9  ;;  %v355_v14 = vld [vmem:[#allocation2 + $0x38] sm:$0xff]  ;;  %v352_v15 = vld [vmem:[#allocation2 + $0x20] sm:$0xff]  ;;  %v354_v19 = vld [vmem:[#allocation2 + $0x30] sm:$0xff]  ;;  %482 = vmatprep.mubr.f32.mxu0 %v914_v22  ;;  %494 = vmatprep.mubr.f32.mxu1 %v914_v22  ;;  %s382_s28 = ssub.s32 0, %s650_s26  ;;  %p381_p10 = scmp.lt.s32.totalorder %s650_s26, 0 }
  0x51   : > { %s1200_s12 = smov (!%p293_p12, %s645_s12), 31  ;;  %v669_v18 = vpack.c.bf16 %v355_v14, %v353_v13  ;;  %v357_v20 = vld [vmem:[#allocation2 + $0x48] sm:$0xff]  ;;  %v359_v21 = vld [vmem:[#allocation2 + $0x58] sm:$0xff]  ;;  %666 = vmatprep.subr.bf16.mxu0 %v665_v11  ;;  %697 = vmatprep.subr.bf16.mxu1 %v665_v11  ;;  %v671_v23 = vpack.c.bf16 %v354_v19, %v352_v15  ;;  %v356_v25 = vld [vmem:[#allocation2 + $0x40] sm:$0xff]  ;;  %s651_s11 = smin.u32 %s650_s26, %s382_s28 }
  0x52   : > { %s646_s9 = sshll.u32 %s1200_s12, 3  ;;  %668 = vmatpush1.bf16.msra.mxu0 %v667_v12  ;;  %705 = vmatpush1.bf16.msra.mxu1 %v667_v12  ;;  %v673_v24 = vpack.c.bf16 %v359_v21, %v357_v20  ;;  %v358_v26 = vld [vmem:[#allocation2 + $0x50] sm:$0xff]  ;;  %v361_v27 = vld [vmem:[#allocation2 + $0x68] sm:$0xff]  ;;  %v363_v28 = vld [vmem:[#allocation2 + $0x78] sm:$0xff]  ;;  %s384_s13 = sand.u32 127, %s651_s11  }
  0x53   : > { %s302_s10 = scalar_lea.vmem %s1175_s1, %s646_s9  ;;  %670 = vmatprep.subr.bf16.mxu0 %v669_v18  ;;  %698 = vmatprep.subr.bf16.mxu1 %v669_v18  ;;  %v675_v29 = vpack.c.bf16 %v358_v26, %v356_v25  ;;  %v677_v30 = vpack.c.bf16 %v363_v28, %v361_v27  ;;  %v360_v31 = vld [vmem:[#allocation2 + $0x60] sm:$0xff]  ;;  %v362_v32 = vld [vmem:[#allocation2 + $0x70] sm:$0xff]  ;;  %v365_v33 = vld [vmem:[#allocation2 + $0x88] sm:$0xff]  ;;  %s296_s18 = scalar_lea.vmem %s1174_s0, %s646_s9 }
  0x54   : > { %v310_v1 = vld [vmem:[%s302_s10 + $0x8] sm:$0xff]  ;;  %v309_v2 = vld [vmem:[%s302_s10] sm:$0xff]  ;;  %v312_v3 = vld [vmem:[%s302_s10 + $0x18] sm:$0xff]  ;;  %v679_v35 = vpack.c.bf16 %v362_v32, %v360_v31  ;;  %s385_s15 = ssub.s32 0, %s384_s13  ;;  %s289_s16 = sand.u32 1, %s899_s22  }
  0x55   : > { %vm314_vm0 = vcmp.gt.f32.partialorder %v310_v1, 0.5  ;;  %vm313_vm1 = vcmp.gt.f32.partialorder %v309_v2, 0.5  ;;  %vm316_vm2 = vcmp.gt.f32.partialorder %v312_v3, 0.5  ;;  %v311_v4 = vld [vmem:[%s302_s10 + $0x10] sm:$0xff]  ;;  %v367_v34 = vld [vmem:[#allocation2 + $0x98] sm:$0xff]  ;;  %v364_v37 = vld [vmem:[#allocation2 + $0x80] sm:$0xff]  ;;  %s1202_s15 = smov (!%p381_p10, %s385_s15), %s384_s13 }
  0x56   : > { %v319_v7 = vsel %vm314_vm0, 1, %v913_v0  ;;  %v318_v8 = vsel %vm313_vm1, 1, %v913_v0  ;;  %vm315_vm3 = vcmp.gt.f32.partialorder %v311_v4, 0.5  ;;  %v321_v16 = vsel %vm316_vm2, 1, %v913_v0  ;;  %672 = vmatpush1.bf16.msra.mxu0 %v671_v23  ;;  %706 = vmatpush1.bf16.msra.mxu1 %v671_v23  ;;  %v366_v38 = vld [vmem:[#allocation2 + $0x90] sm:$0xff]  ;;  %v369_v39 = vld [vmem:[#allocation2 + $0xa8] sm:$0xff] }
  0x57   : > { %326 = vperm.xlu1 %780, %v319_v7   ;;  %323 = vperm.xlu0 %779, %v318_v8   ;;  %v320_v17 = vsel %vm315_vm3, 1, %v913_v0  ;;  %v681_v36 = vpack.c.bf16 %v367_v34, %v365_v33  ;;  %v371_v40 = vld [vmem:[#allocation2 + $0xb8] sm:$0xff]  ;;  %v683_v41 = vpack.c.bf16 %v366_v38, %v364_v37  ;;  %v368_v43 = vld [vmem:[#allocation2 + $0xa0] sm:$0xff]  ;;  %v370_v44 = vld [vmem:[#allocation2 + $0xb0] sm:$0xff]  ;;  %p653_p1 = scmp.lt.s32.totalorder %s1202_s15, 0  ;;  %s391_s12 = sadd.s32 128, %s1202_s15  ;;  %v408_v7 = vlaneseq }
  0x58   : > { %674 = vmatprep.subr.bf16.mxu0 %v673_v24  ;;  %699 = vmatprep.subr.bf16.mxu1 %v673_v24  ;;  %v685_v42 = vpack.c.bf16 %v371_v40, %v369_v39  ;;  %v373_v45 = vld [vmem:[#allocation2 + $0xc8] sm:$0xff]  ;;  %v375_v46 = vld [vmem:[#allocation2 + $0xd8] sm:$0xff]  ;;  %v687_v47 = vpack.c.bf16 %v370_v44, %v368_v43  ;;  %v372_v49 = vld [vmem:[#allocation2 + $0xc0] sm:$0xff]  ;;  %s644_s17 = sshll.u32 %s289_s16, 6  ;;  %s664_s26 = sshll.u32 %s974_s25, 10 }
  0x59   : > { %v689_v48 = vpack.c.bf16 %v375_v46, %v373_v45  ;;  %v374_v50 = vld [vmem:[#allocation2 + $0xd0] sm:$0xff]  ;;  %v377_v51 = vld [vmem:[#allocation2 + $0xe8] sm:$0xff]  ;;  %v379_v52 = vld [vmem:[#allocation2 + $0xf8] sm:$0xff]  ;;  %s1204_s12 = smov (!%p653_p1, %s391_s12), %s1202_s15  ;;  %v409_v8 = vshrl.u32 %v408_v7, 7  ;;  %s1108_s19 = scalar_lea.vmem [#allocation7], %s644_s17 }
  0x5a   : > { %676 = vmatpush1.bf16.msra.mxu0 %v675_v29  ;;  %707 = vmatpush1.bf16.msra.mxu1 %v675_v29  ;;  %v691_v53 = vpack.c.bf16 %v374_v50, %v372_v49  ;;  %v693_v54 = vpack.c.bf16 %v379_v52, %v377_v51  ;;  %v376_v55 = vld [vmem:[#allocation2 + $0xe0] sm:$0xff]  ;;  %v378_v56 = vld [vmem:[#allocation2 + $0xf0] sm:$0xff]  ;;  %v306_v62 = vld [vmem:[%s296_s18 + $0x8] sm:$0xff]  ;;  %s393_s9 = sshra.s32 %s1204_s12, 3  ;;  %s538_s20 = sshll.u32 %s1108_s19, 4  ;;  %s1122_s20 = int_to_ptr.vmem [resolvable:$true] %s538_s20 }
  0x5b   : > { %332 = vperm.xlu1 %780, %v321_v16   ;;  %329 = vperm.xlu0 %779, %v320_v17   ;;  %v695_v57 = vpack.c.bf16 %v378_v56, %v376_v55  ;;  %v305_v58 = vld [vmem:[%s296_s18] sm:$0xff]  ;;  %v307_v0 = vld [vmem:[%s296_s18 + $0x10] sm:$0xff]  ;;  %v308_v5 = vld [vmem:[%s296_s18 + $0x18] sm:$0xff]  ;;  %v410_v9 = vsub.s32 0, %v409_v8  ;;  %s662_s14 = sshll.u32 %s393_s9, 4  ;;  %v414_v11 = vsub.s32 1, %v409_v8  ;;  %s1127_s13 = scalar_lea.hbm %s1180_s6, %s664_s26 }
  0x5c   : > { %678 = vmatprep.subr.bf16.mxu0 %v677_v30  ;;  %700 = vmatprep.subr.bf16.mxu1 %v677_v30  ;;  %v649_v59 = vld [vmem:[%s1176_s2] ss:$0 sm:$0xff]  ;;  %s1102_s18 = scalar_lea.vmem [#allocation5], %s662_s14  ;;  %s1133_s25 = scalar_lea.sflag [#allocation4], %s289_s16 }
  0x5d   : > { %v406_v10 = vld [vmem:[%s1178_s4] sm:$0x3]  ;;  %v399_v17 = vld [vmem:[%s1102_s18 + $0x8] sm:$0xff]  ;;  %v401_v28 = vld [vmem:[%s1102_s18 + $0x18] sm:$0xff]  ;;  %s837_s15 = scalar_lea.vmem %s1122_s20, 1024  ;;  %p1193_p3 = scmp.ne.s32.totalorder %s1184_s7, 0 }
  0x5e   : > { %680 = vmatpush1.bf16.msra.mxu0 %v679_v35  ;;  %708 = vmatpush1.bf16.msra.mxu1 %v679_v35  ;;  %v411_v12 = vrot.slane %v406_v10, %v410_v9  ;;  %v415_v13 = vrot.slane %v406_v10, %v414_v11  ;;  %v398_v14 = vld [vmem:[%s1102_s18] sm:$0xff]  ;;  %v403_v30 = vld [vmem:[%s1102_s18 + $0x28] sm:$0xff]  ;;  %v404_v38 = vld [vmem:[%s1102_s18 + $0x30] sm:$0xff]  ;;  %p838_p2 = scmp.ne.s32.totalorder %s1122_s20, %s837_s15  ;;  %s915_s12 = smov [#allocation7]  }
  0x5f   : > { %682 = vmatprep.subr.bf16.mxu0 %v681_v36  ;;  %701 = vmatprep.subr.bf16.mxu1 %v681_v36  ;;  %v402_v24 = vld [vmem:[%s1102_s18 + $0x20] sm:$0xff]  ;;  %s841_s9 = sshll.u32 %s915_s12, 4  ;;  %s842_s9 = int_to_ptr.vmem [resolvable:$false] %s841_s9 }
  0x60   : > { %p839_p4 = pnand %p838_p2, %p1193_p3  ;;  %s843_s14 = scalar_lea.vmem %s842_s9, 2048 }
  0x61   : > { %p844_p8 = scmp.lt.s32.totalorder %s1122_s20, %s842_s9  ;;  %p845_p11 = scmp.lt.s32.totalorder %s843_s14, %s837_s15 }
  0x62   : > { %684 = vmatpush1.bf16.msra.mxu0 %v683_v41  ;;  %709 = vmatpush1.bf16.msra.mxu1 %v683_v41  ;;  %v405_v41 = vld [vmem:[%s1102_s18 + $0x38] sm:$0xff]  ;;  %p840_p7 = pneg %p839_p4 }
  0x63   : > { %686 = vmatprep.subr.bf16.mxu0 %v685_v42  ;;  %702 = vmatprep.subr.bf16.mxu1 %v685_v42  ;;  %p846_p13 = por %p845_p11, %p844_p8 }
  0x65   : > { %p847_p5 = pnand %p846_p13, %p840_p7 }
  0x66   : > { %688 = vmatpush1.bf16.msra.mxu0 %v687_v47  ;;  %710 = vmatpush1.bf16.msra.mxu1 %v687_v47 }
  0x67   : > { %690 = vmatprep.subr.bf16.mxu0 %v689_v48  ;;  %703 = vmatprep.subr.bf16.mxu1 %v689_v48 }
  0x6a   : > { %692 = vmatpush1.bf16.msra.mxu0 %v691_v53  ;;  %711 = vmatpush1.bf16.msra.mxu1 %v691_v53 }
  0x6b   : > { %694 = vmatprep.subr.bf16.mxu0 %v693_v54  ;;  %704 = vmatprep.subr.bf16.mxu1 %v693_v54 }
  0x6e   : > { %696 = vmatpush1.bf16.msra.mxu0 %v695_v57  ;;  %712 = vmatpush1.bf16.msra.mxu1 %v695_v57 }
  0xd6   : > { %v327_v60 = vpop.permute.xlu1 %326  ;;  %v324_v61 = vpop.permute.xlu0 %323 }
  0xd7   : > { %vm335_vm4 = vcmp.eq.s32.totalorder %v327_v60, 1  ;;  %vm334_vm5 = vcmp.eq.s32.totalorder %v324_v61, 1 }
  0xd8   : > { %v344_v63 = vsel %vm334_vm5, %v649_v59, %v305_v58  ;;  %v345_v3 = vsel %vm335_vm4, %v649_v59, %v306_v62 }
  0xd9   : > { %483 = vmatmul.mubr.f32.vlgmr.msra.gmra.mrb[0].mxu0 %v344_v63 }
  0xda   : > { %v333_v1 = vpop.permute.xlu1 %332  ;;  %v330_v2 = vpop.permute.xlu0 %329  ;;  %488 = vmatprep.mubr.f32.mxu0 %v914_v22 }
  0xdb   : > { %vm336_vm6 = vcmp.eq.s32.totalorder %v330_v2, 1  ;;  %vm337_vm7 = vcmp.eq.s32.totalorder %v333_v1, 1 }
  0xdc   : > { %v346_v4 = vsel %vm336_vm6, %v649_v59, %v307_v0  ;;  %v347_v6 = vsel %vm337_vm7, %v649_v59, %v308_v5 }
  0xdd   : > { %489 = vmatmul.mubr.f32.gmra.mrb[2].mxu0 %v345_v3  ;;  %495 = vmatmul.mubr.f32.vlgmr.msra.gmra.mrb[0].mxu1 %v346_v4 }
  0xde   : > { %500 = vmatprep.mubr.f32.mxu1 %v914_v22  ;;  %v400_v22 = vld [vmem:[%s1102_s18 + $0x10] sm:$0xff] }
  0xe1   : > { %501 = vmatmul.mubr.f32.gmra.mrb[2].mxu1 %v347_v6 }
 0x1ac   : > { %v484_v15 = vpop.f32.mrb[0].mxu0 }
 0x1ad   : > { %v485_v16 = vadd.f32 %v484_v15, %v411_v12  ;;  %v486_v18 = vpop.f32.mrb[1].mxu0 }
 0x1ae   : > { %v487_v19 = vadd.f32 %v486_v18, %v415_v13 }
 0x1af   : > { %v507_v20 = vadd.f32 %v485_v16, %v398_v14 }
 0x1b0   : > { %v508_v21 = vadd.f32 %v487_v19, %v399_v17  ;;  %v490_v23 = vpop.f32.mrb[2].mxu0  ;;  %v496_v25 = vpop.f32.mrb[0].mxu1 }
 0x1b1   : > { %515 = vst [vmem:[%s1108_s19] sm:$0xff] %v507_v20  ;;  %v491_v26 = vadd.f32 %v490_v23, %v411_v12  ;;  %v497_v27 = vadd.f32 %v496_v25, %v411_v12  ;;  %v492_v29 = vpop.f32.mrb[3].mxu0  ;;  %v498_v31 = vpop.f32.mrb[1].mxu1 }
 0x1b2   : > { %516 = vst [vmem:[%s1108_s19 + $0x8] sm:$0xff] %v508_v21  ;;  %v493_v32 = vadd.f32 %v492_v29, %v415_v13  ;;  %v499_v33 = vadd.f32 %v498_v31, %v415_v13 }
 0x1b3   : > { %v509_v34 = vadd.f32 %v491_v26, %v400_v22  ;;  %v511_v35 = vadd.f32 %v497_v27, %v402_v24 }
 0x1b4   : > { %v510_v36 = vadd.f32 %v493_v32, %v401_v28  ;;  %v512_v37 = vadd.f32 %v499_v33, %v403_v30  ;;  %v502_v39 = vpop.f32.mrb[2].mxu1 }
 0x1b5   : > { %517 = vst [vmem:[%s1108_s19 + $0x10] sm:$0xff] %v509_v34  ;;  %519 = vst [vmem:[%s1108_s19 + $0x20] sm:$0xff] %v511_v35  ;;  %v503_v40 = vadd.f32 %v502_v39, %v411_v12  ;;  %v504_v42 = vpop.f32.mrb[3].mxu1 }
 0x1b6   : > { %518 = vst [vmem:[%s1108_s19 + $0x18] sm:$0xff] %v510_v36  ;;  %520 = vst [vmem:[%s1108_s19 + $0x28] sm:$0xff] %v512_v37  ;;  %v505_v43 = vadd.f32 %v504_v42, %v415_v13 }
 0x1b7   : > { %v513_v44 = vadd.f32 %v503_v40, %v404_v38 }
 0x1b8   : > { %v514_v45 = vadd.f32 %v505_v43, %v405_v41 }
 0x1b9   : > { %521 = vst [vmem:[%s1108_s19 + $0x30] sm:$0xff] %v513_v44 }
 0x1ba   : > { %522 = vst [vmem:[%s1108_s19 + $0x38] sm:$0xff] %v514_v45 }
 0x1bb   : > { %850 = shalt.err (!%p847_p5)
}
 0x1bc   : > { %s851_s29 = scalar_lea.hbm %s1127_s13, 1024  ;;  %s855_s17 = scalar_lea.hbm %s1180_s6, 8192 }
 0x1bd   : > { %p852_p0 = scmp.ne.s32.totalorder %s1127_s13, %s851_s29  ;;  %p856_p12 = scmp.lt.u32.totalorder %s1127_s13, %s1180_s6 }
 0x1be   : > { %p857_p10 = scmp.lt.u32.totalorder %s855_s17, %s851_s29  ;;  %p859_p2 = scmp.lt.u32.totalorder %s851_s29, %s1127_s13 }
 0x1bf   : > { %p853_p6 = pnand %p852_p0, %p1193_p3 }
 0x1c0   : > { %p858_p1 = por %p857_p10, %p856_p12 }
 0x1c1   : > { %p854_p9 = pneg %p853_p6 }
 0x1c2   : > { %p860_p4 = por %p859_p2, %p858_p1 }
 0x1c4   : > { %p861_p7 = pnand %p860_p4, %p854_p9 }
 0x1c6   : > { %864 = shalt.err (!%p861_p7)
}
 0x1c7   : > { %s916_s26 = smov 256   ;;  %s917_s28 = smov 16  }
 0x1c8   : > { %721 = dma.vmem_to_hbm [thread:$0]  (%p1193_p3), %s1122_s20, 1024, %s1127_s13, %s1133_s25, %s916_s26, %s916_s26, %s917_s28  }
 0x1c9 PF: > { %p738_p8 = scmp.ge.s32.totalorder %s907_s24, 2  ;;  %s553_s11 = sand.u32 1, %s895_s21  }
 0x1ca   : > { %p1194_p11 = scmp.ne.s32.totalorder %s1185_s8, 0  ;;  %s554_s15 = scalar_lea.sflag [#allocation4], %s553_s11 }
 0x1cc   : > { %p731_p13 = pnand %p738_p8, %p1194_p11 }
 0x1ce   : > { %890 = dma.done.wait (!%p731_p13), %s554_s15, 1024  }
 0x1cf   : > { %892 = vsyncadd (!%p731_p13), %s554_s15, 4294966272  ;;  %p18_p5 = scmp.ge.s32.totalorder %s978_s27, 10   ;;  %s1195_s21 = smov %s899_s22 }
 0x1d0   : > { %s1196_s22 = smov %s903_s23  ;;  %s1197_s23 = smov %s989_s30 }
 0x1d1   : > { %s1198_s24 = smov %s978_s27  ;;  %20 = sbr.rel (!%p18_p5) target bundleno = 5 (0x5), region = 92 }
 0x1d8   :  { %559 = vsyncpa [#allocation3], 1 }
 0x1d9   :  { %561 = vsyncpa [#allocation3 + $0x1], 1 }
 0x1da   :  { %562 = vsyncpa [#allocation6], 1 }
 0x1db   :  { %563 = vsyncpa [#allocation4], 1 }
 0x1dc   :  { %565 = vsyncpa [#allocation4 + $0x1], 1 }

// kernel: tpu_custom_call.1
= control target key start
LH: loop header
LB: loop body
LE: loop exit
PB: predicated region body
PF: predicated region fallthrough
CT: control target
= control target key end

     0   :  { %11 = vsyncpa [#allocation3], 0  ;;  %s1174_s0 = inlined_call_operand.vmem [shape: f32[256,128], index: 0, kind: input, shape index: {}]   ;;  %s1175_s1 = inlined_call_operand.vmem [shape: f32[256,1], index: 1, kind: input, shape index: {}]   ;;  %s1176_s2 = inlined_call_operand.vmem [shape: f32[1,128], index: 2, kind: input, shape index: {}]   ;;  %s1177_s3 = inlined_call_operand.hbm [shape: f32[128,256], index: 3, kind: input, shape index: {}]   ;;  %s1178_s4 = inlined_call_operand.vmem [shape: f32[1,256], index: 4, kind: input, shape index: {}]   ;;  %s1179_s5 = inlined_call_operand.hbm [shape: f32[128,256], index: 5, kind: input, shape index: {}]   ;;  %s1180_s6 = inlined_call_operand.hbm [shape: f32[256,256], index: 6, kind: output, shape index: {}]  }
   0x1   :  { %12 = vsyncpa [#allocation6], 0 }
   0x2   :  { %13 = vsyncpa [#allocation4], 0 }
   0x3   :  { %15 = vsyncpa [#allocation4 + $0x1], 0  ;;  %s953_s21 = smov 0   ;;  %s955_s22 = smov 0  }
   0x4   :  { %s957_s23 = smov 0   ;;  %s959_s24 = smov 0  }
   0x5 LB: > { %s974_s25 = sadd.s32 4294967295, %s907_s24   ;;  %s636_s26 = sadd.s32 4294967294, %s907_s24   ;;  %s907_s24 = sphi %s959_s24, %s1198_s24   ;;  %s903_s23 = sphi %s957_s23, %s1197_s23   ;;  %s899_s22 = sphi %s955_s22, %s1196_s22   ;;  %s895_s21 = sphi %s953_s21, %s1195_s21  }
   0x6   : > { %s978_s27 = sadd.s32 1, %s907_s24   ;;  %s164_s28 = sadd.s32 1, %s903_s23 }
   0x7   : > { %s161_s29 = ssub.s32 %s907_s24, %s978_s27  ;;  %p174_p0 = scmp.ne.s32.totalorder %s903_s23, %s899_s22 }
   0x8   : > { %p162_p1 = scmp.eq.s32.totalorder %s161_s29, 0  ;;  %p175_p2 = scmp.eq.s32.totalorder %s974_s25, 7 }
   0x9   : > { %p180_p3 = scmp.ne.s32.totalorder %s899_s22, %s895_s21  ;;  %p181_p4 = scmp.eq.s32.totalorder %s636_s26, 7 }
   0xa   : > { %s989_s30 = scalar_select %p162_p1, %s903_s23, %s164_s28  }
   0xb   : > { %p991_p5 = por %p175_p2, %p174_p0  ;;  %p995_p6 = por %p181_p4, %p180_p3 }
   0xc   : > { %p637_p7 = scmp.ge.s32.totalorder %s907_s24, 1  ;;  %p188_p8 = scmp.lt.s32.totalorder %s907_s24, 9 }
   0xd   : > { %s1184_s7 = scalar_select %p991_p5, 1, 0 }
   0xe   : > { %s1185_s8 = scalar_select %p995_p6, 1, 0 }
   0xf   : > { %p1181_p9 = scmp.eq.s32.totalorder %s974_s25, 0  ;;  %p1002_p10 = pnand %p637_p7, %p188_p8 }
  0x10   : > { %s909_s10 = smov [#allocation2]   ;;  %s910_s13 = smov [#allocation5]  }
  0x11   : > { %s1186_s9 = scalar_select %p1002_p10, 1, 0 }
  0x12   : > { %s203_s11 = sshll.u32 %s909_s10, 4  ;;  %p723_p11 = pneg %p1002_p10  ;;  %s204_s11 = int_to_ptr.vmem [resolvable:$true] %s203_s11 }
  0x13   : > { %s219_s14 = sshll.u32 %s910_s13, 4  ;;  %s781_s17 = scalar_lea.hbm %s1177_s3, 4096  ;;  %s1014_s14 = int_to_ptr.vmem [resolvable:$true] %s219_s14 }
  0x14   : > { %p1010_p12 = pnand %p1181_p9, %p723_p11  ;;  %p782_p13 = scmp.ne.s32.totalorder %s1177_s3, %s781_s17 }
  0x15   : > { %p788_p3 = scmp.lt.u32.totalorder %s781_s17, %s1177_s3 }
  0x16   : > { %p783_p0 = pneg %p1010_p12 }
  0x18   : > { %p784_p1 = pnand %p783_p0, %p782_p13 }
  0x1a   : > { %p785_p2 = pneg %p784_p1 }
  0x1c   : > { %p790_p4 = pnand %p788_p3, %p785_p2 }
  0x1e   : > { %793 = shalt.err (!%p790_p4)
}
  0x1f   : > { %s794_s28 = scalar_lea.vmem %s204_s11, 4096  ;;  %p802_p9 = scmp.lt.s32.totalorder %s204_s11, %s204_s11 }
  0x20   : > { %p795_p7 = scmp.ne.s32.totalorder %s204_s11, %s794_s28  ;;  %p803_p6 = scmp.lt.s32.totalorder %s794_s28, %s794_s28 }
  0x22   : > { %p797_p8 = pnand %p795_p7, %p783_p0  ;;  %p804_p5 = por %p803_p6, %p802_p9 }
  0x24   : > { %p798_p11 = pneg %p797_p8 }
  0x26   : > { %p805_p10 = pnand %p804_p5, %p798_p11 }
  0x28   : > { %808 = shalt.err (!%p805_p10)
}
  0x29   : > { %s911_s29 = smov 256   ;;  %s912_s10 = smov 16  }
  0x2a   : > { %726 = dma.hbm_to_vmem [thread:$0]  (!%p1010_p12), %s1177_s3, 4096, %s204_s11, [#allocation3], %s911_s29, %s911_s29, %s912_s10  }
  0x2b   : > { %s809_s18 = scalar_lea.hbm %s1179_s5, 4096 }
  0x2c   : > { %p810_p13 = scmp.ne.s32.totalorder %s1179_s5, %s809_s18  ;;  %p816_p9 = scmp.lt.u32.totalorder %s809_s18, %s1179_s5 }
  0x2e   : > { %p812_p5 = pnand %p810_p13, %p783_p0 }
  0x30   : > { %p813_p6 = pneg %p812_p5 }
  0x32   : > { %p818_p10 = pnand %p816_p9, %p813_p6 }
  0x34   : > { %821 = shalt.err (!%p818_p10)
}
  0x35   : > { %s822_s11 = scalar_lea.vmem %s1014_s14, 4096  ;;  %p830_p4 = scmp.lt.s32.totalorder %s1014_s14, %s1014_s14 }
  0x36   : > { %p823_p1 = scmp.ne.s32.totalorder %s1014_s14, %s822_s11  ;;  %p831_p7 = scmp.lt.s32.totalorder %s822_s11, %s822_s11 }
  0x38   : > { %p825_p2 = pnand %p823_p1, %p783_p0  ;;  %p832_p8 = por %p831_p7, %p830_p4 }
  0x3a   : > { %p826_p3 = pneg %p825_p2 }
  0x3c   : > { %p833_p11 = pnand %p832_p8, %p826_p3 }
  0x3e   : > { %836 = shalt.err (!%p833_p11)
}
  0x3f   : > { %729 = dma.hbm_to_vmem [thread:$0]  (!%p1010_p12), %s1179_s5, 4096, %s1014_s14, [#allocation6], %s911_s29, %s911_s29, %s912_s10  }
  0x40   : > { %p1188_p13 = scmp.ne.s32.totalorder %s1186_s9, 0 }
  0x41   : > { %p1189_p5 = scmp.eq.s32.totalorder (!%p1188_p13), %s974_s25, 0 }
  0x42   : > { %253 = sbr.rel (%p1188_p13) target bundleno = 457 (0x1c9), region = 44 }
  0x49   : > { %882 = dma.done.wait (%p1189_p5), [#allocation3], 4096   ;;  %p1190_p0 = pmov %p1189_p5 }
  0x4b   : > { %884 = vsyncadd (%p1190_p0), [#allocation3], 4294963200  ;;  %p1191_p6 = pmov %p1190_p0 }
  0x4c   : > { %p1192_p9 = pmov %p1190_p0 }
  0x4d   : > { %886 = dma.done.wait (%p1191_p6), [#allocation6], 4096  }
  0x4e   : > { %888 = vsyncadd (%p1192_p9), [#allocation6], 4294963200  ;;  %s645_s12 = sshll.u32 %s974_s25, 2  ;;  %v913_v0 = vmov 0   ;;  %v349_v5 = vld [vmem:[#allocation2 + $0x8] sm:$0xff]  ;;  %v351_v6 = vld [vmem:[#allocation2 + $0x18] sm:$0xff] }
  0x4f   : > { %780 = vset.pattern.permute.xlu1 %v913_v0  ;;  %779 = vset.pattern.permute.xlu0 %v913_v0  ;;  %p293_p12 = scmp.lt.s32.totalorder %s645_s12, 31  ;;  %v348_v9 = vld [vmem:[#allocation2] sm:$0xff]  ;;  %v350_v10 = vld [vmem:[#allocation2 + $0x10] sm:$0xff]  ;;  %v665_v11 = vpack.c.bf16 %v351_v6, %v349_v5  ;;  %v353_v13 = vld [vmem:[#allocation2 + $0x28] sm:$0xff]  ;;  %v914_v22 = vmov 0.0   ;;  %s650_s26 = sshll.u32 %s974_s25, 5 }
  0x50   : > { %v667_v12 = vpack.c.bf16 %v350_v10, %v348_v9  ;;  %v355_v14 = vld [vmem:[#allocation2 + $0x38] sm:$0xff]  ;;  %v352_v15 = vld [vmem:[#allocation2 + $0x20] sm:$0xff]  ;;  %v354_v19 = vld [vmem:[#allocation2 + $0x30] sm:$0xff]  ;;  %482 = vmatprep.mubr.f32.mxu0 %v914_v22  ;;  %494 = vmatprep.mubr.f32.mxu1 %v914_v22  ;;  %s382_s28 = ssub.s32 0, %s650_s26  ;;  %p381_p10 = scmp.lt.s32.totalorder %s650_s26, 0 }
  0x51   : > { %s1200_s12 = smov (!%p293_p12, %s645_s12), 31  ;;  %v669_v18 = vpack.c.bf16 %v355_v14, %v353_v13  ;;  %v357_v20 = vld [vmem:[#allocation2 + $0x48] sm:$0xff]  ;;  %v359_v21 = vld [vmem:[#allocation2 + $0x58] sm:$0xff]  ;;  %666 = vmatprep.subr.bf16.mxu0 %v665_v11  ;;  %697 = vmatprep.subr.bf16.mxu1 %v665_v11  ;;  %v671_v23 = vpack.c.bf16 %v354_v19, %v352_v15  ;;  %v356_v25 = vld [vmem:[#allocation2 + $0x40] sm:$0xff]  ;;  %s651_s11 = smin.u32 %s650_s26, %s382_s28 }
  0x52   : > { %s646_s9 = sshll.u32 %s1200_s12, 3  ;;  %668 = vmatpush1.bf16.msra.mxu0 %v667_v12  ;;  %705 = vmatpush1.bf16.msra.mxu1 %v667_v12  ;;  %v673_v24 = vpack.c.bf16 %v359_v21, %v357_v20  ;;  %v358_v26 = vld [vmem:[#allocation2 + $0x50] sm:$0xff]  ;;  %v361_v27 = vld [vmem:[#allocation2 + $0x68] sm:$0xff]  ;;  %v363_v28 = vld [vmem:[#allocation2 + $0x78] sm:$0xff]  ;;  %s384_s13 = sand.u32 127, %s651_s11  }
  0x53   : > { %s302_s10 = scalar_lea.vmem %s1175_s1, %s646_s9  ;;  %670 = vmatprep.subr.bf16.mxu0 %v669_v18  ;;  %698 = vmatprep.subr.bf16.mxu1 %v669_v18  ;;  %v675_v29 = vpack.c.bf16 %v358_v26, %v356_v25  ;;  %v677_v30 = vpack.c.bf16 %v363_v28, %v361_v27  ;;  %v360_v31 = vld [vmem:[#allocation2 + $0x60] sm:$0xff]  ;;  %v362_v32 = vld [vmem:[#allocation2 + $0x70] sm:$0xff]  ;;  %v365_v33 = vld [vmem:[#allocation2 + $0x88] sm:$0xff]  ;;  %s296_s18 = scalar_lea.vmem %s1174_s0, %s646_s9 }
  0x54   : > { %v310_v1 = vld [vmem:[%s302_s10 + $0x8] sm:$0xff]  ;;  %v309_v2 = vld [vmem:[%s302_s10] sm:$0xff]  ;;  %v312_v3 = vld [vmem:[%s302_s10 + $0x18] sm:$0xff]  ;;  %v679_v35 = vpack.c.bf16 %v362_v32, %v360_v31  ;;  %s385_s15 = ssub.s32 0, %s384_s13  ;;  %s289_s16 = sand.u32 1, %s899_s22  }
  0x55   : > { %vm314_vm0 = vcmp.gt.f32.partialorder %v310_v1, 0.5  ;;  %vm313_vm1 = vcmp.gt.f32.partialorder %v309_v2, 0.5  ;;  %vm316_vm2 = vcmp.gt.f32.partialorder %v312_v3, 0.5  ;;  %v311_v4 = vld [vmem:[%s302_s10 + $0x10] sm:$0xff]  ;;  %v367_v34 = vld [vmem:[#allocation2 + $0x98] sm:$0xff]  ;;  %v364_v37 = vld [vmem:[#allocation2 + $0x80] sm:$0xff]  ;;  %s1202_s15 = smov (!%p381_p10, %s385_s15), %s384_s13 }
  0x56   : > { %v319_v7 = vsel %vm314_vm0, 1, %v913_v0  ;;  %v318_v8 = vsel %vm313_vm1, 1, %v913_v0  ;;  %vm315_vm3 = vcmp.gt.f32.partialorder %v311_v4, 0.5  ;;  %v321_v16 = vsel %vm316_vm2, 1, %v913_v0  ;;  %672 = vmatpush1.bf16.msra.mxu0 %v671_v23  ;;  %706 = vmatpush1.bf16.msra.mxu1 %v671_v23  ;;  %v366_v38 = vld [vmem:[#allocation2 + $0x90] sm:$0xff]  ;;  %v369_v39 = vld [vmem:[#allocation2 + $0xa8] sm:$0xff] }
  0x57   : > { %326 = vperm.xlu1 %780, %v319_v7   ;;  %323 = vperm.xlu0 %779, %v318_v8   ;;  %v320_v17 = vsel %vm315_vm3, 1, %v913_v0  ;;  %v681_v36 = vpack.c.bf16 %v367_v34, %v365_v33  ;;  %v371_v40 = vld [vmem:[#allocation2 + $0xb8] sm:$0xff]  ;;  %v683_v41 = vpack.c.bf16 %v366_v38, %v364_v37  ;;  %v368_v43 = vld [vmem:[#allocation2 + $0xa0] sm:$0xff]  ;;  %v370_v44 = vld [vmem:[#allocation2 + $0xb0] sm:$0xff]  ;;  %p653_p1 = scmp.lt.s32.totalorder %s1202_s15, 0  ;;  %s391_s12 = sadd.s32 128, %s1202_s15  ;;  %v408_v7 = vlaneseq }
  0x58   : > { %674 = vmatprep.subr.bf16.mxu0 %v673_v24  ;;  %699 = vmatprep.subr.bf16.mxu1 %v673_v24  ;;  %v685_v42 = vpack.c.bf16 %v371_v40, %v369_v39  ;;  %v373_v45 = vld [vmem:[#allocation2 + $0xc8] sm:$0xff]  ;;  %v375_v46 = vld [vmem:[#allocation2 + $0xd8] sm:$0xff]  ;;  %v687_v47 = vpack.c.bf16 %v370_v44, %v368_v43  ;;  %v372_v49 = vld [vmem:[#allocation2 + $0xc0] sm:$0xff]  ;;  %s644_s17 = sshll.u32 %s289_s16, 6  ;;  %s664_s26 = sshll.u32 %s974_s25, 10 }
  0x59   : > { %v689_v48 = vpack.c.bf16 %v375_v46, %v373_v45  ;;  %v374_v50 = vld [vmem:[#allocation2 + $0xd0] sm:$0xff]  ;;  %v377_v51 = vld [vmem:[#allocation2 + $0xe8] sm:$0xff]  ;;  %v379_v52 = vld [vmem:[#allocation2 + $0xf8] sm:$0xff]  ;;  %s1204_s12 = smov (!%p653_p1, %s391_s12), %s1202_s15  ;;  %v409_v8 = vshrl.u32 %v408_v7, 7  ;;  %s1108_s19 = scalar_lea.vmem [#allocation7], %s644_s17 }
  0x5a   : > { %676 = vmatpush1.bf16.msra.mxu0 %v675_v29  ;;  %707 = vmatpush1.bf16.msra.mxu1 %v675_v29  ;;  %v691_v53 = vpack.c.bf16 %v374_v50, %v372_v49  ;;  %v693_v54 = vpack.c.bf16 %v379_v52, %v377_v51  ;;  %v376_v55 = vld [vmem:[#allocation2 + $0xe0] sm:$0xff]  ;;  %v378_v56 = vld [vmem:[#allocation2 + $0xf0] sm:$0xff]  ;;  %v306_v62 = vld [vmem:[%s296_s18 + $0x8] sm:$0xff]  ;;  %s393_s9 = sshra.s32 %s1204_s12, 3  ;;  %s538_s20 = sshll.u32 %s1108_s19, 4  ;;  %s1122_s20 = int_to_ptr.vmem [resolvable:$true] %s538_s20 }
  0x5b   : > { %332 = vperm.xlu1 %780, %v321_v16   ;;  %329 = vperm.xlu0 %779, %v320_v17   ;;  %v695_v57 = vpack.c.bf16 %v378_v56, %v376_v55  ;;  %v305_v58 = vld [vmem:[%s296_s18] sm:$0xff]  ;;  %v307_v0 = vld [vmem:[%s296_s18 + $0x10] sm:$0xff]  ;;  %v308_v5 = vld [vmem:[%s296_s18 + $0x18] sm:$0xff]  ;;  %v410_v9 = vsub.s32 0, %v409_v8  ;;  %s662_s14 = sshll.u32 %s393_s9, 4  ;;  %v414_v11 = vsub.s32 1, %v409_v8  ;;  %s1127_s13 = scalar_lea.hbm %s1180_s6, %s664_s26 }
  0x5c   : > { %678 = vmatprep.subr.bf16.mxu0 %v677_v30  ;;  %700 = vmatprep.subr.bf16.mxu1 %v677_v30  ;;  %v649_v59 = vld [vmem:[%s1176_s2] ss:$0 sm:$0xff]  ;;  %s1102_s18 = scalar_lea.vmem [#allocation5], %s662_s14  ;;  %s1133_s25 = scalar_lea.sflag [#allocation4], %s289_s16 }
  0x5d   : > { %v406_v10 = vld [vmem:[%s1178_s4] sm:$0x3]  ;;  %v399_v17 = vld [vmem:[%s1102_s18 + $0x8] sm:$0xff]  ;;  %v401_v28 = vld [vmem:[%s1102_s18 + $0x18] sm:$0xff]  ;;  %s837_s15 = scalar_lea.vmem %s1122_s20, 1024  ;;  %p1193_p3 = scmp.ne.s32.totalorder %s1184_s7, 0 }
  0x5e   : > { %680 = vmatpush1.bf16.msra.mxu0 %v679_v35  ;;  %708 = vmatpush1.bf16.msra.mxu1 %v679_v35  ;;  %v411_v12 = vrot.slane %v406_v10, %v410_v9  ;;  %v415_v13 = vrot.slane %v406_v10, %v414_v11  ;;  %v398_v14 = vld [vmem:[%s1102_s18] sm:$0xff]  ;;  %v403_v30 = vld [vmem:[%s1102_s18 + $0x28] sm:$0xff]  ;;  %v404_v38 = vld [vmem:[%s1102_s18 + $0x30] sm:$0xff]  ;;  %p838_p2 = scmp.ne.s32.totalorder %s1122_s20, %s837_s15  ;;  %s915_s12 = smov [#allocation7]  }
  0x5f   : > { %682 = vmatprep.subr.bf16.mxu0 %v681_v36  ;;  %701 = vmatprep.subr.bf16.mxu1 %v681_v36  ;;  %v402_v24 = vld [vmem:[%s1102_s18 + $0x20] sm:$0xff]  ;;  %s841_s9 = sshll.u32 %s915_s12, 4  ;;  %s842_s9 = int_to_ptr.vmem [resolvable:$false] %s841_s9 }
  0x60   : > { %p839_p4 = pnand %p838_p2, %p1193_p3  ;;  %s843_s14 = scalar_lea.vmem %s842_s9, 2048 }
  0x61   : > { %p844_p8 = scmp.lt.s32.totalorder %s1122_s20, %s842_s9  ;;  %p845_p11 = scmp.lt.s32.totalorder %s843_s14, %s837_s15 }
  0x62   : > { %684 = vmatpush1.bf16.msra.mxu0 %v683_v41  ;;  %709 = vmatpush1.bf16.msra.mxu1 %v683_v41  ;;  %v405_v41 = vld [vmem:[%s1102_s18 + $0x38] sm:$0xff]  ;;  %p840_p7 = pneg %p839_p4 }
  0x63   : > { %686 = vmatprep.subr.bf16.mxu0 %v685_v42  ;;  %702 = vmatprep.subr.bf16.mxu1 %v685_v42  ;;  %p846_p13 = por %p845_p11, %p844_p8 }
  0x65   : > { %p847_p5 = pnand %p846_p13, %p840_p7 }
  0x66   : > { %688 = vmatpush1.bf16.msra.mxu0 %v687_v47  ;;  %710 = vmatpush1.bf16.msra.mxu1 %v687_v47 }
  0x67   : > { %690 = vmatprep.subr.bf16.mxu0 %v689_v48  ;;  %703 = vmatprep.subr.bf16.mxu1 %v689_v48 }
  0x6a   : > { %692 = vmatpush1.bf16.msra.mxu0 %v691_v53  ;;  %711 = vmatpush1.bf16.msra.mxu1 %v691_v53 }
  0x6b   : > { %694 = vmatprep.subr.bf16.mxu0 %v693_v54  ;;  %704 = vmatprep.subr.bf16.mxu1 %v693_v54 }
  0x6e   : > { %696 = vmatpush1.bf16.msra.mxu0 %v695_v57  ;;  %712 = vmatpush1.bf16.msra.mxu1 %v695_v57 }
  0xd6   : > { %v327_v60 = vpop.permute.xlu1 %326  ;;  %v324_v61 = vpop.permute.xlu0 %323 }
  0xd7   : > { %vm335_vm4 = vcmp.eq.s32.totalorder %v327_v60, 1  ;;  %vm334_vm5 = vcmp.eq.s32.totalorder %v324_v61, 1 }
  0xd8   : > { %v344_v63 = vsel %vm334_vm5, %v649_v59, %v305_v58  ;;  %v345_v3 = vsel %vm335_vm4, %v649_v59, %v306_v62 }
  0xd9   : > { %483 = vmatmul.mubr.f32.vlgmr.msra.gmra.mrb[0].mxu0 %v344_v63 }
  0xda   : > { %v333_v1 = vpop.permute.xlu1 %332  ;;  %v330_v2 = vpop.permute.xlu0 %329  ;;  %488 = vmatprep.mubr.f32.mxu0 %v914_v22 }
  0xdb   : > { %vm336_vm6 = vcmp.eq.s32.totalorder %v330_v2, 1  ;;  %vm337_vm7 = vcmp.eq.s32.totalorder %v333_v1, 1 }
  0xdc   : > { %v346_v4 = vsel %vm336_vm6, %v649_v59, %v307_v0  ;;  %v347_v6 = vsel %vm337_vm7, %v649_v59, %v308_v5 }
  0xdd   : > { %489 = vmatmul.mubr.f32.gmra.mrb[2].mxu0 %v345_v3  ;;  %495 = vmatmul.mubr.f32.vlgmr.msra.gmra.mrb[0].mxu1 %v346_v4 }
  0xde   : > { %500 = vmatprep.mubr.f32.mxu1 %v914_v22  ;;  %v400_v22 = vld [vmem:[%s1102_s18 + $0x10] sm:$0xff] }
  0xe1   : > { %501 = vmatmul.mubr.f32.gmra.mrb[2].mxu1 %v347_v6 }
 0x1ac   : > { %v484_v15 = vpop.f32.mrb[0].mxu0 }
 0x1ad   : > { %v485_v16 = vadd.f32 %v484_v15, %v411_v12  ;;  %v486_v18 = vpop.f32.mrb[1].mxu0 }
 0x1ae   : > { %v487_v19 = vadd.f32 %v486_v18, %v415_v13 }
 0x1af   : > { %v507_v20 = vadd.f32 %v485_v16, %v398_v14 }
 0x1b0   : > { %v508_v21 = vadd.f32 %v487_v19, %v399_v17  ;;  %v490_v23 = vpop.f32.mrb[2].mxu0  ;;  %v496_v25 = vpop.f32.mrb[0].mxu1 }
 0x1b1   : > { %515 = vst [vmem:[%s1108_s19] sm:$0xff] %v507_v20  ;;  %v491_v26 = vadd.f32 %v490_v23, %v411_v12  ;;  %v497_v27 = vadd.f32 %v496_v25, %v411_v12  ;;  %v492_v29 = vpop.f32.mrb[3].mxu0  ;;  %v498_v31 = vpop.f32.mrb[1].mxu1 }
 0x1b2   : > { %516 = vst [vmem:[%s1108_s19 + $0x8] sm:$0xff] %v508_v21  ;;  %v493_v32 = vadd.f32 %v492_v29, %v415_v13  ;;  %v499_v33 = vadd.f32 %v498_v31, %v415_v13 }
 0x1b3   : > { %v509_v34 = vadd.f32 %v491_v26, %v400_v22  ;;  %v511_v35 = vadd.f32 %v497_v27, %v402_v24 }
 0x1b4   : > { %v510_v36 = vadd.f32 %v493_v32, %v401_v28  ;;  %v512_v37 = vadd.f32 %v499_v33, %v403_v30  ;;  %v502_v39 = vpop.f32.mrb[2].mxu1 }
 0x1b5   : > { %517 = vst [vmem:[%s1108_s19 + $0x10] sm:$0xff] %v509_v34  ;;  %519 = vst [vmem:[%s1108_s19 + $0x20] sm:$0xff] %v511_v35  ;;  %v503_v40 = vadd.f32 %v502_v39, %v411_v12  ;;  %v504_v42 = vpop.f32.mrb[3].mxu1 }
 0x1b6   : > { %518 = vst [vmem:[%s1108_s19 + $0x18] sm:$0xff] %v510_v36  ;;  %520 = vst [vmem:[%s1108_s19 + $0x28] sm:$0xff] %v512_v37  ;;  %v505_v43 = vadd.f32 %v504_v42, %v415_v13 }
 0x1b7   : > { %v513_v44 = vadd.f32 %v503_v40, %v404_v38 }
 0x1b8   : > { %v514_v45 = vadd.f32 %v505_v43, %v405_v41 }
 0x1b9   : > { %521 = vst [vmem:[%s1108_s19 + $0x30] sm:$0xff] %v513_v44 }
 0x1ba   : > { %522 = vst [vmem:[%s1108_s19 + $0x38] sm:$0xff] %v514_v45 }
 0x1bb   : > { %850 = shalt.err (!%p847_p5)
}
 0x1bc   : > { %s851_s29 = scalar_lea.hbm %s1127_s13, 1024  ;;  %s855_s17 = scalar_lea.hbm %s1180_s6, 8192 }
 0x1bd   : > { %p852_p0 = scmp.ne.s32.totalorder %s1127_s13, %s851_s29  ;;  %p856_p12 = scmp.lt.u32.totalorder %s1127_s13, %s1180_s6 }
 0x1be   : > { %p857_p10 = scmp.lt.u32.totalorder %s855_s17, %s851_s29  ;;  %p859_p2 = scmp.lt.u32.totalorder %s851_s29, %s1127_s13 }
 0x1bf   : > { %p853_p6 = pnand %p852_p0, %p1193_p3 }
 0x1c0   : > { %p858_p1 = por %p857_p10, %p856_p12 }
 0x1c1   : > { %p854_p9 = pneg %p853_p6 }
 0x1c2   : > { %p860_p4 = por %p859_p2, %p858_p1 }
 0x1c4   : > { %p861_p7 = pnand %p860_p4, %p854_p9 }
 0x1c6   : > { %864 = shalt.err (!%p861_p7)
}
 0x1c7   : > { %s916_s26 = smov 256   ;;  %s917_s28 = smov 16  }
 0x1c8   : > { %721 = dma.vmem_to_hbm [thread:$0]  (%p1193_p3), %s1122_s20, 1024, %s1127_s13, %s1133_s25, %s916_s26, %s916_s26, %s917_s28  }
 0x1c9 PF: > { %p738_p8 = scmp.ge.s32.totalorder %s907_s24, 2  ;;  %s553_s11 = sand.u32 1, %s895_s21  }
 0x1ca   : > { %p1194_p11 = scmp.ne.s32.totalorder %s1185_s8, 0  ;;  %s554_s15 = scalar_lea.sflag [#allocation4], %s553_s11 }
 0x1cc   : > { %p731_p13 = pnand %p738_p8, %p1194_p11 }
 0x1ce   : > { %890 = dma.done.wait (!%p731_p13), %s554_s15, 1024  }
 0x1cf   : > { %892 = vsyncadd (!%p731_p13), %s554_s15, 4294966272  ;;  %p18_p5 = scmp.ge.s32.totalorder %s978_s27, 10   ;;  %s1195_s21 = smov %s899_s22 }
 0x1d0   : > { %s1196_s22 = smov %s903_s23  ;;  %s1197_s23 = smov %s989_s30 }
 0x1d1   : > { %s1198_s24 = smov %s978_s27  ;;  %20 = sbr.rel (!%p18_p5) target bundleno = 5 (0x5), region = 92 }
 0x1d8   :  { %559 = vsyncpa [#allocation3], 1 }
 0x1d9   :  { %561 = vsyncpa [#allocation3 + $0x1], 1 }
 0x1da   :  { %562 = vsyncpa [#allocation6], 1 }
 0x1db   :  { %563 = vsyncpa [#allocation4], 1 }
 0x1dc   :  { %565 = vsyncpa [#allocation4 + $0x1], 1 }

</bundles_post_ra>
